<compile_context>
chip_gen: v7x
topology: tpu7x:2x2x1
jax: 0.10.0
libtpu: 0.0.40
codegen_flags: <defaults>
</compile_context>

<pallas_src>
import jax
import jax.numpy as jnp
from jax.experimental import pallas as pl
from jax.experimental.pallas import tpu as pltpu

LANE = 128      # lane width
SUBLANE = 16    # bf16 sublane packing


def _round_up(x, m):
    return (x + m - 1) // m * m


def _cdiv(a, b):
    return -(-a // b)


def decoder_kernel(z_ref,
                   w4_ref, b4_ref,
                   w3_ref, b3_ref,
                   w2_ref, b2_ref,
                   w1_ref, b1_ref,
                   wr_ref, br_ref,
                   out_ref):
    """Fused forward pass on one batch tile:
         h4 = relu(z  @ W4 + b4)
         h3 = relu(h4 @ W3 + b3)
         h2 = relu(h3 @ W2 + b2)
         h1 = relu(h2 @ W1 + b1)
         out =      h1 @ Wr + br
    MXU inputs are bf16; accumulation, bias add and ReLU stay in f32
    (safe on v5e); each hidden activation is cast to bf16 once for the
    next layer's dot.
    """
    cdt = jnp.bfloat16

    def hidden(h, w_ref, b_ref):
        y = jnp.dot(h, w_ref[...], preferred_element_type=jnp.float32) + b_ref[...]
        return jnp.maximum(y, 0.0).astype(cdt)

    h = hidden(z_ref[...], w4_ref, b4_ref)
    h = hidden(h, w3_ref, b3_ref)
    h = hidden(h, w2_ref, b2_ref)
    h = hidden(h, w1_ref, b1_ref)
    y = jnp.dot(h, wr_ref[...], preferred_element_type=jnp.float32) + br_ref[...]
    out_ref[...] = y.astype(out_ref.dtype)


def decoder_forward(z, params, *, block_m=512, out_dtype=jnp.bfloat16,
                    vmem_budget_bytes=40 * 1024 * 1024):
    """z: [B, encoder_dim] float32.  params: dict of f32 weights/biases
    (w*: [in, out], b*: [1, out]).  Returns [B, input_dim] in out_dtype."""
    B, enc_dim = z.shape
    input_dim = params["wr"].shape[1]

    # ---- pad every feature dim to a multiple of 128 (lane-dense outputs, and
    #      every contraction dim becomes a bf16-sublane multiple as well).
    enc_p = _round_up(enc_dim, LANE)
    h4_p = _round_up(params["w4"].shape[1], LANE)
    h3_p = _round_up(params["w3"].shape[1], LANE)
    h2_p = _round_up(params["w2"].shape[1], LANE)
    h1_p = _round_up(params["w1"].shape[1], LANE)
    out_p = _round_up(input_dim, LANE)

    def prep_w(w, rows_p, cols_p):
        w = w.astype(jnp.bfloat16)
        return jnp.pad(w, ((0, rows_p - w.shape[0]), (0, cols_p - w.shape[1])))

    def prep_b(b, cols_p):
        b = b.astype(jnp.float32)
        return jnp.pad(b, ((0, 0), (0, cols_p - b.shape[1])))

    w4 = prep_w(params["w4"], enc_p, h4_p); b4 = prep_b(params["b4"], h4_p)
    w3 = prep_w(params["w3"], h4_p, h3_p);  b3 = prep_b(params["b3"], h3_p)
    w2 = prep_w(params["w2"], h3_p, h2_p);  b2 = prep_b(params["b2"], h2_p)
    w1 = prep_w(params["w1"], h2_p, h1_p);  b1 = prep_b(params["b1"], h1_p)
    wr = prep_w(params["wr"], h1_p, out_p); br = prep_b(params["br"], out_p)

    weights = (w4, b4, w3, b3, w2, b2, w1, b1, wr, br)
    weight_bytes = sum(int(a.size) * a.dtype.itemsize for a in weights)

    # ---- batch tile from an explicit VMEM budget (v7x has only 64 MiB).
    out_itemsize = jnp.dtype(out_dtype).itemsize
    per_row = (2 * enc_p * 2                        # double-buffered bf16 z tile
               + 2 * out_p * out_itemsize           # double-buffered out tile
               + 4 * max(h4_p, h3_p, h2_p, h1_p))   # f32 working activations
    avail = max(vmem_budget_bytes - weight_bytes, SUBLANE * per_row)
    tm_max = max(SUBLANE, (avail // per_row) // SUBLANE * SUBLANE)
    tm_max = min(tm_max, _round_up(max(block_m, SUBLANE), SUBLANE))

    n_tiles = _cdiv(B, tm_max)
    if n_tiles == 1 and B >= 256:
        n_tiles = 2          # give both v7x TensorCores a grid step to shard
    tm = min(tm_max, _round_up(_cdiv(B, n_tiles), SUBLANE))
    n_tiles = _cdiv(B, tm)
    b_pad = n_tiles * tm

    z_p = jnp.pad(z.astype(jnp.bfloat16),
                  ((0, b_pad - B), (0, enc_p - enc_dim)))

    # ---- BlockSpecs: z/out tiled over the batch; weights pinned, single-buffered.
    def pinned(arr):
        return pl.BlockSpec(arr.shape, lambda i: (0, 0),
                            pipeline_mode=pl.Buffered(1))

    in_specs = [pl.BlockSpec((tm, enc_p), lambda i: (i, 0))]
    in_specs += [pinned(a) for a in weights]
    out_spec = pl.BlockSpec((tm, out_p), lambda i: (i, 0))

    flops = 2 * b_pad * (enc_p * h4_p + h4_p * h3_p + h3_p * h2_p
                         + h2_p * h1_p + h1_p * out_p)
    bytes_accessed = (int(z_p.size) * 2 + weight_bytes
                      + b_pad * out_p * out_itemsize)

    vmem_limit = int(min(60 << 20,
                         max(32 << 20, weight_bytes + tm * per_row + (4 << 20))))

    out = pl.pallas_call(
        decoder_kernel,
        out_shape=jax.ShapeDtypeStruct((b_pad, out_p), out_dtype),
        grid=(n_tiles,),
        in_specs=in_specs,
        out_specs=out_spec,
        compiler_params=pltpu.CompilerParams(
            dimension_semantics=("parallel",),
            vmem_limit_bytes=vmem_limit),
        cost_estimate=pl.CostEstimate(
            flops=flops, transcendentals=0, bytes_accessed=bytes_accessed),
    )(z_p, *weights)

    return out[:B, :input_dim]


def init_params(key, input_dim, hidden1, hidden2, hidden3, hidden4, encoder_dim):
    """Deterministic synthetic init (Kaiming-uniform-ish scale like nn.Linear)."""
    dims = [
        ("w4", encoder_dim, hidden4),
        ("w3", hidden4, hidden3),
        ("w2", hidden3, hidden2),
        ("w1", hidden2, hidden1),
        ("wr", hidden1, input_dim),
    ]
    params = {}
    for name, fan_in, fan_out in dims:
        key, kw, kb = jax.random.split(key, 3)
        bound = 1.0 / jnp.sqrt(jnp.float32(fan_in))
        params[name] = jax.random.uniform(
            kw, (fan_in, fan_out), jnp.float32, minval=-bound, maxval=bound)
        params["b" + name[1:]] = jax.random.uniform(
            kb, (1, fan_out), jnp.float32, minval=-bound, maxval=bound)
    return params


def reference_forward_f32(z, params):
    """Plain-JAX f32 reference of the PyTorch module's math."""
    act = lambda v: jnp.maximum(v, 0.0)
    h = act(z @ params["w4"] + params["b4"])
    h = act(h @ params["w3"] + params["b3"])
    h = act(h @ params["w2"] + params["b2"])
    h = act(h @ params["w1"] + params["b1"])
    return h @ params["wr"] + params["br"]


def reference_forward_mixed(z, params):
    """Plain-JAX reference with the same bf16-in / f32-accum recipe as the kernel."""
    cdt = jnp.bfloat16

    def layer(h, w, b, relu=True):
        y = jnp.dot(h.astype(cdt), w.astype(cdt),
                    preferred_element_type=jnp.float32) + b
        return jnp.maximum(y, 0.0) if relu else y

    h = layer(z, params["w4"], params["b4"])
    h = layer(h, params["w3"], params["b3"])
    h = layer(h, params["w2"], params["b2"])
    h = layer(h, params["w1"], params["b1"])
    return layer(h, params["wr"], params["br"], relu=False)


if __name__ == "__main__":
    # Small shapes consistent with the module's constructor arguments.
    input_dim, hidden1, hidden2, hidden3, hidden4, encoder_dim = 64, 48, 40, 32, 24, 16
    batch = 2

    key = jax.random.PRNGKey(0)
    key, kz = jax.random.split(key)
    params = init_params(key, input_dim, hidden1, hidden2, hidden3, hidden4,
                         encoder_dim)
    z = jax.random.normal(kz, (batch, encoder_dim), jnp.float32)

    out = decoder_forward(z, params)          # bf16 output (perf default)
    out = jax.block_until_ready(out)
    assert out.shape == (batch, input_dim)
    out_f32 = out.astype(jnp.float32)

    # Check against a reference using the identical mixed-precision recipe
    # (only extra error is the final bf16 output cast).
    ref_mixed = reference_forward_mixed(z, params)
    diff_mixed = float(jnp.max(jnp.abs(out_f32 - ref_mixed)))
    assert jnp.allclose(out_f32, ref_mixed, atol=5e-2, rtol=5e-2), (
        "max |diff| vs mixed ref = %g" % diff_mixed)

    # Loose check against the full-f32 PyTorch-equivalent math.
    ref_f32 = reference_forward_f32(z, params)
    diff_f32 = float(jnp.max(jnp.abs(out_f32 - ref_f32)))
    assert jnp.allclose(out_f32, ref_f32, atol=2e-1, rtol=2e-1), (
        "max |diff| vs f32 ref = %g" % diff_f32)

    print("KERNEL_OK")
</pallas_src>

<mosaic_0001>
module attributes {stable_mosaic.version = 11 : i64} {
  func.func @decoder_kernel(%arg0: i32, %arg1: memref<16x128xbf16, #tpu.memory_space<vmem>>, %arg2: memref<128x128xbf16, #tpu.memory_space<vmem>>, %arg3: memref<1x128xf32, #tpu.memory_space<vmem>>, %arg4: memref<128x128xbf16, #tpu.memory_space<vmem>>, %arg5: memref<1x128xf32, #tpu.memory_space<vmem>>, %arg6: memref<128x128xbf16, #tpu.memory_space<vmem>>, %arg7: memref<1x128xf32, #tpu.memory_space<vmem>>, %arg8: memref<128x128xbf16, #tpu.memory_space<vmem>>, %arg9: memref<1x128xf32, #tpu.memory_space<vmem>>, %arg10: memref<128x128xbf16, #tpu.memory_space<vmem>>, %arg11: memref<1x128xf32, #tpu.memory_space<vmem>>, %arg12: memref<16x128xbf16, #tpu.memory_space<vmem>>) attributes {dimension_semantics = [#tpu.dimension_semantics<parallel>], iteration_bounds = array<i64: 1>, scalar_prefetch = 0 : i64, scratch_operands = 0 : i64, tpu.core_type = #tpu.core_type<tc>, window_params = [{transform_indices = @transform_0, window_bounds = array<i64: 16, 128>}, {pipeline_mode = #tpu.pipeline_mode<synchronous>, transform_indices = @transform_1, window_bounds = array<i64: 128, 128>}, {pipeline_mode = #tpu.pipeline_mode<synchronous>, transform_indices = @transform_2, window_bounds = array<i64: 1, 128>}, {pipeline_mode = #tpu.pipeline_mode<synchronous>, transform_indices = @transform_3, window_bounds = array<i64: 128, 128>}, {pipeline_mode = #tpu.pipeline_mode<synchronous>, transform_indices = @transform_4, window_bounds = array<i64: 1, 128>}, {pipeline_mode = #tpu.pipeline_mode<synchronous>, transform_indices = @transform_5, window_bounds = array<i64: 128, 128>}, {pipeline_mode = #tpu.pipeline_mode<synchronous>, transform_indices = @transform_6, window_bounds = array<i64: 1, 128>}, {pipeline_mode = #tpu.pipeline_mode<synchronous>, transform_indices = @transform_7, window_bounds = array<i64: 128, 128>}, {pipeline_mode = #tpu.pipeline_mode<synchronous>, transform_indices = @transform_8, window_bounds = array<i64: 1, 128>}, {pipeline_mode = #tpu.pipeline_mode<synchronous>, transform_indices = @transform_9, window_bounds = array<i64: 128, 128>}, {pipeline_mode = #tpu.pipeline_mode<synchronous>, transform_indices = @transform_10, window_bounds = array<i64: 1, 128>}, {transform_indices = @transform_11, window_bounds = array<i64: 16, 128>}]} {
    %c0 = arith.constant 0 : index
    %c0_0 = arith.constant 0 : index
    %0 = vector.load %arg1[%c0, %c0_0] : memref<16x128xbf16, #tpu.memory_space<vmem>>, vector<16x128xbf16>
    %c0_1 = arith.constant 0 : index
    %c0_2 = arith.constant 0 : index
    %1 = vector.load %arg2[%c0_1, %c0_2] : memref<128x128xbf16, #tpu.memory_space<vmem>>, vector<128x128xbf16>
    %cst = arith.constant dense<0.000000e+00> : vector<16x128xf32>
    %2 = tpu.matmul %0, %1, %cst {dimension_numbers = #tpu.dot_dimension_numbers<[1], [0], [0], [1], [0, 0, 1, 1], [], []>} : vector<16x128xbf16>, vector<128x128xbf16>, vector<16x128xf32> -> vector<16x128xf32>
    %c0_3 = arith.constant 0 : index
    %c0_4 = arith.constant 0 : index
    %3 = vector.load %arg3[%c0_3, %c0_4] : memref<1x128xf32, #tpu.memory_space<vmem>>, vector<1x128xf32>
    %4 = vector.broadcast %3 : vector<1x128xf32> to vector<16x128xf32>
    %5 = arith.addf %2, %4 : vector<16x128xf32>
    %cst_5 = arith.constant 0.000000e+00 : f32
    %6 = vector.broadcast %cst_5 : f32 to vector<16x128xf32>
    %7 = arith.maximumf %5, %6 : vector<16x128xf32>
    %8 = arith.truncf %7 : vector<16x128xf32> to vector<16x128xbf16>
    %c0_6 = arith.constant 0 : index
    %c0_7 = arith.constant 0 : index
    %9 = vector.load %arg4[%c0_6, %c0_7] : memref<128x128xbf16, #tpu.memory_space<vmem>>, vector<128x128xbf16>
    %cst_8 = arith.constant dense<0.000000e+00> : vector<16x128xf32>
    %10 = tpu.matmul %8, %9, %cst_8 {dimension_numbers = #tpu.dot_dimension_numbers<[1], [0], [0], [1], [0, 0, 1, 1], [], []>} : vector<16x128xbf16>, vector<128x128xbf16>, vector<16x128xf32> -> vector<16x128xf32>
    %c0_9 = arith.constant 0 : index
    %c0_10 = arith.constant 0 : index
    %11 = vector.load %arg5[%c0_9, %c0_10] : memref<1x128xf32, #tpu.memory_space<vmem>>, vector<1x128xf32>
    %12 = vector.broadcast %11 : vector<1x128xf32> to vector<16x128xf32>
    %13 = arith.addf %10, %12 : vector<16x128xf32>
    %cst_11 = arith.constant 0.000000e+00 : f32
    %14 = vector.broadcast %cst_11 : f32 to vector<16x128xf32>
    %15 = arith.maximumf %13, %14 : vector<16x128xf32>
    %16 = arith.truncf %15 : vector<16x128xf32> to vector<16x128xbf16>
    %c0_12 = arith.constant 0 : index
    %c0_13 = arith.constant 0 : index
    %17 = vector.load %arg6[%c0_12, %c0_13] : memref<128x128xbf16, #tpu.memory_space<vmem>>, vector<128x128xbf16>
    %cst_14 = arith.constant dense<0.000000e+00> : vector<16x128xf32>
    %18 = tpu.matmul %16, %17, %cst_14 {dimension_numbers = #tpu.dot_dimension_numbers<[1], [0], [0], [1], [0, 0, 1, 1], [], []>} : vector<16x128xbf16>, vector<128x128xbf16>, vector<16x128xf32> -> vector<16x128xf32>
    %c0_15 = arith.constant 0 : index
    %c0_16 = arith.constant 0 : index
    %19 = vector.load %arg7[%c0_15, %c0_16] : memref<1x128xf32, #tpu.memory_space<vmem>>, vector<1x128xf32>
    %20 = vector.broadcast %19 : vector<1x128xf32> to vector<16x128xf32>
    %21 = arith.addf %18, %20 : vector<16x128xf32>
    %cst_17 = arith.constant 0.000000e+00 : f32
    %22 = vector.broadcast %cst_17 : f32 to vector<16x128xf32>
    %23 = arith.maximumf %21, %22 : vector<16x128xf32>
    %24 = arith.truncf %23 : vector<16x128xf32> to vector<16x128xbf16>
    %c0_18 = arith.constant 0 : index
    %c0_19 = arith.constant 0 : index
    %25 = vector.load %arg8[%c0_18, %c0_19] : memref<128x128xbf16, #tpu.memory_space<vmem>>, vector<128x128xbf16>
    %cst_20 = arith.constant dense<0.000000e+00> : vector<16x128xf32>
    %26 = tpu.matmul %24, %25, %cst_20 {dimension_numbers = #tpu.dot_dimension_numbers<[1], [0], [0], [1], [0, 0, 1, 1], [], []>} : vector<16x128xbf16>, vector<128x128xbf16>, vector<16x128xf32> -> vector<16x128xf32>
    %c0_21 = arith.constant 0 : index
    %c0_22 = arith.constant 0 : index
    %27 = vector.load %arg9[%c0_21, %c0_22] : memref<1x128xf32, #tpu.memory_space<vmem>>, vector<1x128xf32>
    %28 = vector.broadcast %27 : vector<1x128xf32> to vector<16x128xf32>
    %29 = arith.addf %26, %28 : vector<16x128xf32>
    %cst_23 = arith.constant 0.000000e+00 : f32
    %30 = vector.broadcast %cst_23 : f32 to vector<16x128xf32>
    %31 = arith.maximumf %29, %30 : vector<16x128xf32>
    %32 = arith.truncf %31 : vector<16x128xf32> to vector<16x128xbf16>
    %c0_24 = arith.constant 0 : index
    %c0_25 = arith.constant 0 : index
    %33 = vector.load %arg10[%c0_24, %c0_25] : memref<128x128xbf16, #tpu.memory_space<vmem>>, vector<128x128xbf16>
    %cst_26 = arith.constant dense<0.000000e+00> : vector<16x128xf32>
    %34 = tpu.matmul %32, %33, %cst_26 {dimension_numbers = #tpu.dot_dimension_numbers<[1], [0], [0], [1], [0, 0, 1, 1], [], []>} : vector<16x128xbf16>, vector<128x128xbf16>, vector<16x128xf32> -> vector<16x128xf32>
    %c0_27 = arith.constant 0 : index
    %c0_28 = arith.constant 0 : index
    %35 = vector.load %arg11[%c0_27, %c0_28] : memref<1x128xf32, #tpu.memory_space<vmem>>, vector<1x128xf32>
    %36 = vector.broadcast %35 : vector<1x128xf32> to vector<16x128xf32>
    %37 = arith.addf %34, %36 : vector<16x128xf32>
    %38 = arith.truncf %37 : vector<16x128xf32> to vector<16x128xbf16>
    %c0_29 = arith.constant 0 : index
    %c0_30 = arith.constant 0 : index
    %39 = vector.load %arg12[%c0_29, %c0_30] : memref<16x128xbf16, #tpu.memory_space<vmem>>, vector<16x128xbf16>
    tpu.vector_store %arg12[%c0_29, %c0_30], %38 {strides = array<i32>} : memref<16x128xbf16, #tpu.memory_space<vmem>>, vector<16x128xbf16>,
    return
  }
  func.func @transform_0(%arg0: i32) -> (i32, i32) {
    %c0_i32 = arith.constant 0 : i32
    %c0_i32_0 = arith.constant 0 : i32
    return %arg0, %c0_i32 : i32, i32
  }
  func.func @transform_1(%arg0: i32) -> (i32, i32) {
    %c0_i32 = arith.constant 0 : i32
    %c0_i32_0 = arith.constant 0 : i32
    %c0_i32_1 = arith.constant 0 : i32
    return %c0_i32, %c0_i32_0 : i32, i32
  }
  func.func @transform_2(%arg0: i32) -> (i32, i32) {
    %c0_i32 = arith.constant 0 : i32
    %c0_i32_0 = arith.constant 0 : i32
    %c0_i32_1 = arith.constant 0 : i32
    return %c0_i32, %c0_i32_0 : i32, i32
  }
  func.func @transform_3(%arg0: i32) -> (i32, i32) {
    %c0_i32 = arith.constant 0 : i32
    %c0_i32_0 = arith.constant 0 : i32
    %c0_i32_1 = arith.constant 0 : i32
    return %c0_i32, %c0_i32_0 : i32, i32
  }
  func.func @transform_4(%arg0: i32) -> (i32, i32) {
    %c0_i32 = arith.constant 0 : i32
    %c0_i32_0 = arith.constant 0 : i32
    %c0_i32_1 = arith.constant 0 : i32
    return %c0_i32, %c0_i32_0 : i32, i32
  }
  func.func @transform_5(%arg0: i32) -> (i32, i32) {
    %c0_i32 = arith.constant 0 : i32
    %c0_i32_0 = arith.constant 0 : i32
    %c0_i32_1 = arith.constant 0 : i32
    return %c0_i32, %c0_i32_0 : i32, i32
  }
  func.func @transform_6(%arg0: i32) -> (i32, i32) {
    %c0_i32 = arith.constant 0 : i32
    %c0_i32_0 = arith.constant 0 : i32
    %c0_i32_1 = arith.constant 0 : i32
    return %c0_i32, %c0_i32_0 : i32, i32
  }
  func.func @transform_7(%arg0: i32) -> (i32, i32) {
    %c0_i32 = arith.constant 0 : i32
    %c0_i32_0 = arith.constant 0 : i32
    %c0_i32_1 = arith.constant 0 : i32
    return %c0_i32, %c0_i32_0 : i32, i32
  }
  func.func @transform_8(%arg0: i32) -> (i32, i32) {
    %c0_i32 = arith.constant 0 : i32
    %c0_i32_0 = arith.constant 0 : i32
    %c0_i32_1 = arith.constant 0 : i32
    return %c0_i32, %c0_i32_0 : i32, i32
  }
  func.func @transform_9(%arg0: i32) -> (i32, i32) {
    %c0_i32 = arith.constant 0 : i32
    %c0_i32_0 = arith.constant 0 : i32
    %c0_i32_1 = arith.constant 0 : i32
    return %c0_i32, %c0_i32_0 : i32, i32
  }
  func.func @transform_10(%arg0: i32) -> (i32, i32) {
    %c0_i32 = arith.constant 0 : i32
    %c0_i32_0 = arith.constant 0 : i32
    %c0_i32_1 = arith.constant 0 : i32
    return %c0_i32, %c0_i32_0 : i32, i32
  }
  func.func @transform_11(%arg0: i32) -> (i32, i32) {
    %c0_i32 = arith.constant 0 : i32
    %c0_i32_0 = arith.constant 0 : i32
    return %arg0, %c0_i32 : i32, i32
  }
}

</mosaic_0001>

<bundles_post_ra>
// kernel: tpu_custom_call.1
= control target key start
LH: loop header
LB: loop body
LE: loop exit
PB: predicated region body
PF: predicated region fallthrough
CT: control target
= control target key end

     0   :  { %16 = vsyncpa [#allocation3], 0  ;;  %s1410_s0 = inlined_call_operand.hbm [shape: bf16[16,128], index: 0, kind: input, shape index: {}]   ;;  %s1411_s1 = inlined_call_operand.hbm [shape: bf16[128,128], index: 1, kind: input, shape index: {}]   ;;  %s1412_s2 = inlined_call_operand.vmem [shape: f32[1,128], index: 2, kind: input, shape index: {}]   ;;  %s1413_s3 = inlined_call_operand.hbm [shape: bf16[128,128], index: 3, kind: input, shape index: {}]   ;;  %s1414_s4 = inlined_call_operand.vmem [shape: f32[1,128], index: 4, kind: input, shape index: {}]   ;;  %s1415_s5 = inlined_call_operand.hbm [shape: bf16[128,128], index: 5, kind: input, shape index: {}]   ;;  %s1416_s6 = inlined_call_operand.vmem [shape: f32[1,128], index: 6, kind: input, shape index: {}]   ;;  %s1417_s7 = inlined_call_operand.hbm [shape: bf16[128,128], index: 7, kind: input, shape index: {}]   ;;  %s1418_s8 = inlined_call_operand.vmem [shape: f32[1,128], index: 8, kind: input, shape index: {}]   ;;  %s1419_s9 = inlined_call_operand.hbm [shape: bf16[128,128], index: 9, kind: input, shape index: {}]   ;;  %s1420_s10 = inlined_call_operand.vmem [shape: f32[1,128], index: 10, kind: input, shape index: {}]   ;;  %s1421_s11 = inlined_call_operand.hbm [shape: bf16[16,128], index: 11, kind: output, shape index: {}]  }
   0x1   :  { %17 = vsyncpa [#allocation6], 0 }
   0x2   :  { %18 = vsyncpa [#allocation9], 0 }
   0x3   :  { %19 = vsyncpa [#allocation12], 0 }
   0x4   :  { %20 = vsyncpa [#allocation4], 0  ;;  %s1148_s17 = smov [#allocation5]   ;;  %s1149_s19 = smov [#allocation8]  }
   0x5   :  { %s38_s18 = sshll.u32 %s1148_s17, 4  ;;  %s66_s20 = sshll.u32 %s1149_s19, 4  ;;  %s39_s18 = int_to_ptr.vmem [resolvable:$true] %s38_s18  ;;  %s1219_s20 = int_to_ptr.vmem [resolvable:$true] %s66_s20 }
   0x6   :  { %s984_s23 = scalar_lea.hbm %s1411_s1, 1024 }
   0x7   :  { %p985_p0 = scmp.ne.s32.totalorder %s1411_s1, %s984_s23  ;;  %p988_p1 = scmp.lt.u32.totalorder %s984_s23, %s1411_s1 }
   0x9   :  { %p990_p2 = pnand %p988_p1, %p985_p0 }
   0xb   :  { %993 = shalt.err (!%p990_p2)
}
   0xc   :  { %s994_s28 = scalar_lea.vmem %s39_s18, 1024  ;;  %p999_p4 = scmp.lt.s32.totalorder %s39_s18, %s39_s18 }
   0xd   :  { %p995_p3 = scmp.ne.s32.totalorder %s39_s18, %s994_s28  ;;  %p1000_p5 = scmp.lt.s32.totalorder %s994_s28, %s994_s28 }
   0xf   :  { %p1001_p6 = por %p1000_p5, %p999_p4 }
  0x11   :  { %p1002_p7 = pnand %p1001_p6, %p995_p3 }
  0x13   :  { %1005 = shalt.err (!%p1002_p7)
}
  0x14   :  { %s1150_s29 = smov 64   ;;  %s1151_s30 = smov 4  }
  0x15   :  { %44 = dma.hbm_to_vmem [thread:$0]  %s1411_s1, 1024, %s39_s18, [#allocation6], %s1150_s29, %s1150_s29, %s1151_s30  }
  0x16   :  { %s1006_s16 = scalar_lea.hbm %s1415_s5, 1024 }
  0x17   :  { %p1007_p8 = scmp.ne.s32.totalorder %s1415_s5, %s1006_s16  ;;  %p1010_p9 = scmp.lt.u32.totalorder %s1006_s16, %s1415_s5 }
  0x19   :  { %p1012_p10 = pnand %p1010_p9, %p1007_p8 }
  0x1b   :  { %1015 = shalt.err (!%p1012_p10)
}
  0x1c   :  { %s1016_s23 = scalar_lea.vmem %s1219_s20, 1024  ;;  %p1021_p12 = scmp.lt.s32.totalorder %s1219_s20, %s1219_s20 }
  0x1d   :  { %p1017_p11 = scmp.ne.s32.totalorder %s1219_s20, %s1016_s23  ;;  %p1022_p13 = scmp.lt.s32.totalorder %s1016_s23, %s1016_s23 }
  0x1f   :  { %p1023_p0 = por %p1022_p13, %p1021_p12 }
  0x21   :  { %p1024_p1 = pnand %p1023_p0, %p1017_p11 }
  0x23   :  { %1027 = shalt.err (!%p1024_p1)
}
  0x24   :  { %72 = dma.hbm_to_vmem [thread:$0]  %s1415_s5, 1024, %s1219_s20, [#allocation9], %s1150_s29, %s1150_s29, %s1151_s30  }
  0x25   :  { %s1152_s24 = smov [#allocation2]   ;;  %s1153_s26 = smov [#allocation7]  }
  0x26   :  { %s26_s25 = sshll.u32 %s1152_s24, 4  ;;  %s52_s27 = sshll.u32 %s1153_s26, 4  ;;  %s27_s25 = int_to_ptr.vmem [resolvable:$true] %s26_s25  ;;  %s1256_s27 = int_to_ptr.vmem [resolvable:$true] %s52_s27 }
  0x27   :  { %s1028_s13 = scalar_lea.hbm %s1410_s0, 128 }
  0x28   :  { %p1029_p2 = scmp.ne.s32.totalorder %s1410_s0, %s1028_s13  ;;  %p1032_p3 = scmp.lt.u32.totalorder %s1028_s13, %s1410_s0 }
  0x2a   :  { %p1034_p4 = pnand %p1032_p3, %p1029_p2 }
  0x2c   :  { %1037 = shalt.err (!%p1034_p4)
}
  0x2d   :  { %s1038_s5 = scalar_lea.vmem %s27_s25, 128  ;;  %p1043_p6 = scmp.lt.s32.totalorder %s27_s25, %s27_s25 }
  0x2e   :  { %p1039_p5 = scmp.ne.s32.totalorder %s27_s25, %s1038_s5  ;;  %p1044_p7 = scmp.lt.s32.totalorder %s1038_s5, %s1038_s5 }
  0x30   :  { %p1045_p8 = por %p1044_p7, %p1043_p6 }
  0x32   :  { %p1046_p9 = pnand %p1045_p8, %p1039_p5 }
  0x34   :  { %1049 = shalt.err (!%p1046_p9)
}
  0x35   :  { %32 = dma.hbm_to_vmem [thread:$0]  %s1410_s0, 128, %s27_s25, [#allocation3], %s1150_s29, %s1150_s29, %s1151_s30  }
  0x36   :  { %s1050_s23 = scalar_lea.hbm %s1413_s3, 1024 }
  0x37   :  { %p1051_p10 = scmp.ne.s32.totalorder %s1413_s3, %s1050_s23  ;;  %p1054_p11 = scmp.lt.u32.totalorder %s1050_s23, %s1413_s3 }
  0x39   :  { %p1056_p12 = pnand %p1054_p11, %p1051_p10 }
  0x3b   :  { %1059 = shalt.err (!%p1056_p12)
}
  0x3c   :  { %s1060_s28 = scalar_lea.vmem %s1256_s27, 1024  ;;  %p1065_p0 = scmp.lt.s32.totalorder %s1256_s27, %s1256_s27 }
  0x3d   :  { %p1061_p13 = scmp.ne.s32.totalorder %s1256_s27, %s1060_s28  ;;  %p1066_p1 = scmp.lt.s32.totalorder %s1060_s28, %s1060_s28 }
  0x3f   :  { %p1067_p2 = por %p1066_p1, %p1065_p0 }
  0x41   :  { %p1068_p3 = pnand %p1067_p2, %p1061_p13 }
  0x43   :  { %1071 = shalt.err (!%p1068_p3)
}
  0x44   :  { %58 = dma.hbm_to_vmem [thread:$0]  %s1413_s3, 1024, %s1256_s27, [#allocation6], %s1150_s29, %s1150_s29, %s1151_s30  }
  0x45   :  { %s1154_s12 = smov [#allocation10]   ;;  %s1155_s14 = smov [#allocation11]  }
  0x46   :  { %s80_s13 = sshll.u32 %s1154_s12, 4  ;;  %s94_s15 = sshll.u32 %s1155_s14, 4  ;;  %s81_s13 = int_to_ptr.vmem [resolvable:$true] %s80_s13  ;;  %s1293_s15 = int_to_ptr.vmem [resolvable:$true] %s94_s15 }
  0x47   :  { %s1072_s5 = scalar_lea.hbm %s1417_s7, 1024 }
  0x48   :  { %p1073_p4 = scmp.ne.s32.totalorder %s1417_s7, %s1072_s5  ;;  %p1076_p5 = scmp.lt.u32.totalorder %s1072_s5, %s1417_s7 }
  0x4a   :  { %p1078_p6 = pnand %p1076_p5, %p1073_p4 }
  0x4c   :  { %1081 = shalt.err (!%p1078_p6)
}
  0x4d   :  { %s1082_s3 = scalar_lea.vmem %s81_s13, 1024  ;;  %p1087_p8 = scmp.lt.s32.totalorder %s81_s13, %s81_s13 }
  0x4e   :  { %p1083_p7 = scmp.ne.s32.totalorder %s81_s13, %s1082_s3  ;;  %p1088_p9 = scmp.lt.s32.totalorder %s1082_s3, %s1082_s3 }
  0x50   :  { %p1089_p10 = por %p1088_p9, %p1087_p8 }
  0x52   :  { %p1090_p11 = pnand %p1089_p10, %p1083_p7 }
  0x54   :  { %1093 = shalt.err (!%p1090_p11)
}
  0x55   :  { %86 = dma.hbm_to_vmem [thread:$0]  %s1417_s7, 1024, %s81_s13, [#allocation9], %s1150_s29, %s1150_s29, %s1151_s30  }
  0x56   :  { %s1094_s24 = scalar_lea.hbm %s1419_s9, 1024 }
  0x57   :  { %p1095_p12 = scmp.ne.s32.totalorder %s1419_s9, %s1094_s24  ;;  %p1098_p13 = scmp.lt.u32.totalorder %s1094_s24, %s1419_s9 }
  0x59   :  { %p1100_p0 = pnand %p1098_p13, %p1095_p12 }
  0x5b   :  { %1103 = shalt.err (!%p1100_p0)
}
  0x5c   :  { %s1104_s12 = scalar_lea.vmem %s1293_s15, 1024  ;;  %p1109_p2 = scmp.lt.s32.totalorder %s1293_s15, %s1293_s15 }
  0x5d   :  { %p1105_p1 = scmp.ne.s32.totalorder %s1293_s15, %s1104_s12  ;;  %p1110_p3 = scmp.lt.s32.totalorder %s1104_s12, %s1104_s12 }
  0x5f   :  { %p1111_p4 = por %p1110_p3, %p1109_p2 }
  0x61   :  { %p1112_p5 = pnand %p1111_p4, %p1105_p1 }
  0x63   :  { %1115 = shalt.err (!%p1112_p5)
}
  0x64   :  { %100 = dma.hbm_to_vmem [thread:$0]  %s1419_s9, 1024, %s1293_s15, [#allocation12], %s1150_s29, %s1150_s29, %s1151_s30  }
  0x65   :  { %1138 = dma.done.wait [#allocation3], 128  }
  0x66   :  { %1139 = vsyncadd [#allocation3], 4294967168 }
  0x67   :  { %1140 = dma.done.wait [#allocation6], 2048  }
  0x68   :  { %1141 = vsyncadd [#allocation6], 4294965248 }
  0x69   :  { %1142 = dma.done.wait [#allocation9], 2048  }
  0x6a   :  { %1143 = vsyncadd [#allocation9], 4294965248 }
  0x6b   :  { %1144 = dma.done.wait [#allocation12], 1024  }
  0x6c   :  { %1145 = vsyncadd [#allocation12], 4294966272  ;;  %v1156_v0 = vmov 0.0   ;;  %vm1157_vm0 = vmmov 0   ;;  %v943_v1 = vld [vmem:[#allocation5] sm:$0xff]   ;;  %v944_v2 = vld [vmem:[#allocation5 + $0x8] sm:$0xff]  }
  0x6d   :  { %832 = vmatprep.subr.bf16.mxu0 %v1156_v0  ;;  %848 = vmatprep.mubr.msk.bf16.mxu0 %vm1157_vm0, %v1156_v0  ;;  %v945_v3 = vld [vmem:[#allocation5 + $0x10] sm:$0xff]   ;;  %v952_v4 = vld [vmem:[#allocation7] sm:$0xff]   ;;  %v946_v5 = vld [vmem:[#allocation5 + $0x18] sm:$0xff]   ;;  %s1158_s19 = smov [#allocation13]  }
  0x6e   :  { %852 = vmatprep.subr.bf16.mxu1 %v1156_v0  ;;  %868 = vmatprep.mubr.msk.bf16.mxu1 %vm1157_vm0, %v1156_v0  ;;  %v953_v6 = vld [vmem:[#allocation7 + $0x8] sm:$0xff]   ;;  %v947_v7 = vld [vmem:[#allocation5 + $0x20] sm:$0xff]   ;;  %v954_v8 = vld [vmem:[#allocation7 + $0x10] sm:$0xff]   ;;  %s717_s21 = sshll.u32 %s1158_s19, 4  ;;  %s718_s21 = int_to_ptr.vmem [resolvable:$true] %s717_s21 }
  0x6f   :  { %833 = vmatpush3.bf16.msra.mxu0 %v943_v1  ;;  %853 = vmatpush3.bf16.msra.mxu1 %v952_v4  ;;  %v948_v9 = vld [vmem:[#allocation5 + $0x28] sm:$0xff]   ;;  %v955_v10 = vld [vmem:[#allocation7 + $0x18] sm:$0xff]   ;;  %v949_v11 = vld [vmem:[#allocation5 + $0x30] sm:$0xff]   ;;  %p1121_p7 = scmp.lt.s32.totalorder %s718_s21, %s718_s21 }
  0x70   :  { %834 = vmatprep.subr.bf16.mxu0 %v1156_v0  ;;  %854 = vmatprep.subr.bf16.mxu1 %v1156_v0  ;;  %v956_v12 = vld [vmem:[#allocation7 + $0x20] sm:$0xff]   ;;  %v950_v13 = vld [vmem:[#allocation5 + $0x38] sm:$0xff]   ;;  %v957_v14 = vld [vmem:[#allocation7 + $0x28] sm:$0xff]  }
  0x71   :  { %v951_v15 = vld [vmem:[#allocation2] sm:$0xff]   ;;  %v958_v16 = vld [vmem:[#allocation7 + $0x30] sm:$0xff]   ;;  %v960_v18 = vld [vmem:[#allocation8] sm:$0xff]  }
  0x72   :  { %v959_v17 = vld [vmem:[#allocation7 + $0x38] sm:$0xff]   ;;  %v961_v19 = vld [vmem:[#allocation8 + $0x8] sm:$0xff]   ;;  %v962_v20 = vld [vmem:[#allocation8 + $0x10] sm:$0xff]  }
  0x73   :  { %835 = vmatpush3.bf16.msra.mxu0 %v944_v2  ;;  %855 = vmatpush3.bf16.msra.mxu1 %v953_v6  ;;  %v963_v21 = vld [vmem:[#allocation8 + $0x18] sm:$0xff]   ;;  %v964_v22 = vld [vmem:[#allocation8 + $0x20] sm:$0xff]   ;;  %v965_v23 = vld [vmem:[#allocation8 + $0x28] sm:$0xff]  }
  0x74   :  { %836 = vmatprep.subr.bf16.mxu0 %v1156_v0  ;;  %856 = vmatprep.subr.bf16.mxu1 %v1156_v0  ;;  %v732_v24 = vld [vmem:[%s1412_s2] ss:$0 sm:$0xff]  ;;  %v966_v34 = vld [vmem:[#allocation8 + $0x30] sm:$0xff]   ;;  %v968_v36 = vld [vmem:[#allocation10] sm:$0xff]  }
  0x75   :  { %v967_v35 = vld [vmem:[#allocation8 + $0x38] sm:$0xff]   ;;  %v969_v37 = vld [vmem:[#allocation10 + $0x8] sm:$0xff]   ;;  %v970_v38 = vld [vmem:[#allocation10 + $0x10] sm:$0xff]  }
  0x76   :  { %v971_v39 = vld [vmem:[#allocation10 + $0x18] sm:$0xff]   ;;  %v972_v40 = vld [vmem:[#allocation10 + $0x20] sm:$0xff]   ;;  %v973_v41 = vld [vmem:[#allocation10 + $0x28] sm:$0xff]  }
  0x77   :  { %837 = vmatpush3.bf16.msra.mxu0 %v945_v3  ;;  %857 = vmatpush3.bf16.msra.mxu1 %v954_v8  ;;  %v742_v42 = vld [vmem:[%s1414_s4] ss:$0 sm:$0xff]  ;;  %v974_v52 = vld [vmem:[#allocation10 + $0x30] sm:$0xff]   ;;  %v976_v54 = vld [vmem:[#allocation11] sm:$0xff]  }
  0x78   :  { %838 = vmatprep.subr.bf16.mxu0 %v1156_v0  ;;  %858 = vmatprep.subr.bf16.mxu1 %v1156_v0  ;;  %v975_v53 = vld [vmem:[#allocation10 + $0x38] sm:$0xff]   ;;  %v977_v55 = vld [vmem:[#allocation11 + $0x8] sm:$0xff]   ;;  %v978_v56 = vld [vmem:[#allocation11 + $0x10] sm:$0xff]  }
  0x79   :  { %v979_v57 = vld [vmem:[#allocation11 + $0x18] sm:$0xff]   ;;  %v980_v58 = vld [vmem:[#allocation11 + $0x20] sm:$0xff]   ;;  %v981_v59 = vld [vmem:[#allocation11 + $0x28] sm:$0xff]  }
  0x7a   :  { %v751_v60 = vld [vmem:[%s1416_s6] ss:$0 sm:$0xff] }
  0x7b   :  { %839 = vmatpush3.bf16.msra.mxu0 %v946_v5  ;;  %859 = vmatpush3.bf16.msra.mxu1 %v955_v10  ;;  %v983_v8 = vld [vmem:[#allocation11 + $0x38] sm:$0xff]  }
  0x7c   :  { %840 = vmatprep.subr.bf16.mxu0 %v1156_v0  ;;  %860 = vmatprep.subr.bf16.mxu1 %v1156_v0 }
  0x7f   :  { %841 = vmatpush3.bf16.msra.mxu0 %v947_v7  ;;  %861 = vmatpush3.bf16.msra.mxu1 %v956_v12  ;;  %v982_v7 = vld [vmem:[#allocation11 + $0x30] sm:$0xff]  }
  0x80   :  { %842 = vmatprep.subr.bf16.mxu0 %v1156_v0  ;;  %862 = vmatprep.subr.bf16.mxu1 %v1156_v0 }
  0x83   :  { %843 = vmatpush3.bf16.msra.mxu0 %v948_v9  ;;  %863 = vmatpush3.bf16.msra.mxu1 %v957_v14  ;;  %v760_v9 = vld [vmem:[%s1418_s8] ss:$0 sm:$0xff]  ;;  %s1116_s8 = scalar_lea.vmem %s718_s21, 128 }
  0x84   :  { %844 = vmatprep.subr.bf16.mxu0 %v1156_v0  ;;  %864 = vmatprep.subr.bf16.mxu1 %v1156_v0  ;;  %p1117_p6 = scmp.ne.s32.totalorder %s718_s21, %s1116_s8  ;;  %p1122_p8 = scmp.lt.s32.totalorder %s1116_s8, %s1116_s8 }
  0x86   :  { %p1123_p9 = por %p1122_p8, %p1121_p7 }
  0x87   :  { %845 = vmatpush3.bf16.msra.mxu0 %v949_v11  ;;  %865 = vmatpush3.bf16.msra.mxu1 %v958_v16 }
  0x88   :  { %846 = vmatprep.subr.bf16.mxu0 %v1156_v0  ;;  %866 = vmatprep.subr.bf16.mxu1 %v1156_v0  ;;  %p1124_p10 = pnand %p1123_p9, %p1117_p6 }
  0x8b   :  { %847 = vmatpush3.bf16.msra.mxu0 %v950_v13  ;;  %867 = vmatpush3.bf16.msra.mxu1 %v959_v17 }
  0x8c   :  { %872 = vmatprep.subr.bf16.mxu0 %v1156_v0  ;;  %892 = vmatprep.subr.bf16.mxu1 %v1156_v0 }
  0x8e   :  { %849 = vmatmul.mubr.bf16.vlgmr.msra.gmra.mrb[0].mxu0 %v951_v15 }
  0x8f   :  { %888 = vmatprep.mubr.msk.bf16.mxu0 %vm1157_vm0, %v1156_v0  ;;  %873 = vmatpush3.bf16.msra.mxu0 %v960_v18 }
  0x90   :  { %874 = vmatprep.subr.bf16.mxu0 %v1156_v0 }
  0x93   :  { %875 = vmatpush3.bf16.msra.mxu0 %v961_v19 }
  0x94   :  { %876 = vmatprep.subr.bf16.mxu0 %v1156_v0 }
  0x97   :  { %877 = vmatpush3.bf16.msra.mxu0 %v962_v20 }
  0x98   :  { %878 = vmatprep.subr.bf16.mxu0 %v1156_v0 }
  0x9b   :  { %879 = vmatpush3.bf16.msra.mxu0 %v963_v21 }
  0x9c   :  { %880 = vmatprep.subr.bf16.mxu0 %v1156_v0 }
  0x9f   :  { %881 = vmatpush3.bf16.msra.mxu0 %v964_v22 }
  0xa0   :  { %882 = vmatprep.subr.bf16.mxu0 %v1156_v0 }
  0xa3   :  { %883 = vmatpush3.bf16.msra.mxu0 %v965_v23 }
  0xa4   :  { %884 = vmatprep.subr.bf16.mxu0 %v1156_v0 }
  0xa7   :  { %885 = vmatpush3.bf16.msra.mxu0 %v966_v34 }
  0xa8   :  { %886 = vmatprep.subr.bf16.mxu0 %v1156_v0 }
  0xab   :  { %887 = vmatpush3.bf16.msra.mxu0 %v967_v35 }
  0xac   :  { %912 = vmatprep.subr.bf16.mxu0 %v1156_v0 }
 0x161   :  { %v235_v25 = vpop.f32.mrb[0].mxu0 }
 0x162   :  { %v236_v26 = vadd.f32 %v732_v24, %v235_v25  ;;  %v850_v27 = vpop.f32.mrb[1].mxu0 }
 0x163   :  { %v238_v28 = vpop.f32.mrb[2].mxu0 }
 0x164   :  { %v239_v29 = vadd.f32 %v732_v24, %v238_v28  ;;  %v851_v30 = vpop.f32.mrb[3].mxu0  ;;  %v242_v31 = vmax.f32 %v236_v26, 0.0 }
 0x166   :  { %v243_v32 = vmax.f32 %v239_v29, 0.0 }
 0x168   :  { %v244_v33 = vpack.c.bf16 %v243_v32, %v242_v31 }
 0x16a   :  { %869 = vmatmul.mubr.bf16.vlgmr.msra.gmra.mrb[0].mxu1 %v244_v33 }
 0x16b   :  { %908 = vmatprep.mubr.msk.bf16.mxu1 %vm1157_vm0, %v1156_v0  ;;  %893 = vmatpush3.bf16.msra.mxu1 %v968_v36 }
 0x16c   :  { %894 = vmatprep.subr.bf16.mxu1 %v1156_v0 }
 0x16f   :  { %895 = vmatpush3.bf16.msra.mxu1 %v969_v37 }
 0x170   :  { %896 = vmatprep.subr.bf16.mxu1 %v1156_v0 }
 0x173   :  { %897 = vmatpush3.bf16.msra.mxu1 %v970_v38 }
 0x174   :  { %898 = vmatprep.subr.bf16.mxu1 %v1156_v0 }
 0x177   :  { %899 = vmatpush3.bf16.msra.mxu1 %v971_v39 }
 0x178   :  { %900 = vmatprep.subr.bf16.mxu1 %v1156_v0 }
 0x17b   :  { %901 = vmatpush3.bf16.msra.mxu1 %v972_v40 }
 0x17c   :  { %902 = vmatprep.subr.bf16.mxu1 %v1156_v0 }
 0x17f   :  { %903 = vmatpush3.bf16.msra.mxu1 %v973_v41 }
 0x180   :  { %904 = vmatprep.subr.bf16.mxu1 %v1156_v0 }
 0x183   :  { %905 = vmatpush3.bf16.msra.mxu1 %v974_v52 }
 0x184   :  { %906 = vmatprep.subr.bf16.mxu1 %v1156_v0 }
 0x187   :  { %907 = vmatpush3.bf16.msra.mxu1 %v975_v53 }
 0x23d   :  { %v350_v43 = vpop.f32.mrb[0].mxu1 }
 0x23e   :  { %v351_v44 = vadd.f32 %v742_v42, %v350_v43  ;;  %v870_v45 = vpop.f32.mrb[1].mxu1 }
 0x23f   :  { %v353_v46 = vpop.f32.mrb[2].mxu1 }
 0x240   :  { %v354_v47 = vadd.f32 %v742_v42, %v353_v46  ;;  %v871_v48 = vpop.f32.mrb[3].mxu1  ;;  %v357_v49 = vmax.f32 %v351_v44, 0.0 }
 0x242   :  { %v358_v50 = vmax.f32 %v354_v47, 0.0 }
 0x244   :  { %v359_v51 = vpack.c.bf16 %v358_v50, %v357_v49 }
 0x246   :  { %889 = vmatmul.mubr.bf16.vlgmr.msra.gmra.mrb[4].mxu0 %v359_v51 }
 0x247   :  { %928 = vmatprep.mubr.msk.bf16.mxu0 %vm1157_vm0, %v1156_v0  ;;  %913 = vmatpush3.bf16.msra.mxu0 %v976_v54 }
 0x248   :  { %914 = vmatprep.subr.bf16.mxu0 %v1156_v0 }
 0x24b   :  { %915 = vmatpush3.bf16.msra.mxu0 %v977_v55 }
 0x24c   :  { %916 = vmatprep.subr.bf16.mxu0 %v1156_v0 }
 0x24f   :  { %917 = vmatpush3.bf16.msra.mxu0 %v978_v56 }
 0x250   :  { %918 = vmatprep.subr.bf16.mxu0 %v1156_v0 }
 0x253   :  { %919 = vmatpush3.bf16.msra.mxu0 %v979_v57 }
 0x254   :  { %920 = vmatprep.subr.bf16.mxu0 %v1156_v0 }
 0x257   :  { %921 = vmatpush3.bf16.msra.mxu0 %v980_v58 }
 0x258   :  { %922 = vmatprep.subr.bf16.mxu0 %v1156_v0 }
 0x25b   :  { %923 = vmatpush3.bf16.msra.mxu0 %v981_v59 }
 0x25c   :  { %924 = vmatprep.subr.bf16.mxu0 %v1156_v0 }
 0x25f   :  { %925 = vmatpush3.bf16.msra.mxu0 %v982_v7 }
 0x260   :  { %926 = vmatprep.subr.bf16.mxu0 %v1156_v0  ;;  %v769_v0 = vld [vmem:[%s1420_s10] ss:$0 sm:$0xff] }
 0x263   :  { %927 = vmatpush3.bf16.msra.mxu0 %v983_v8 }
 0x319   :  { %v465_v61 = vpop.f32.mrb[4].mxu0 }
 0x31a   :  { %v466_v62 = vadd.f32 %v751_v60, %v465_v61  ;;  %v890_v63 = vpop.f32.mrb[5].mxu0 }
 0x31b   :  { %v468_v1 = vpop.f32.mrb[6].mxu0 }
 0x31c   :  { %v469_v2 = vadd.f32 %v751_v60, %v468_v1  ;;  %v891_v3 = vpop.f32.mrb[7].mxu0  ;;  %v472_v4 = vmax.f32 %v466_v62, 0.0 }
 0x31e   :  { %v473_v5 = vmax.f32 %v469_v2, 0.0 }
 0x320   :  { %v474_v6 = vpack.c.bf16 %v473_v5, %v472_v4 }
 0x322   :  { %909 = vmatmul.mubr.bf16.vlgmr.msra.gmra.mrb[4].mxu1 %v474_v6 }
 0x3f5   :  { %v580_v10 = vpop.f32.mrb[4].mxu1 }
 0x3f6   :  { %v581_v11 = vadd.f32 %v760_v9, %v580_v10  ;;  %v910_v12 = vpop.f32.mrb[5].mxu1 }
 0x3f7   :  { %v583_v13 = vpop.f32.mrb[6].mxu1 }
 0x3f8   :  { %v584_v14 = vadd.f32 %v760_v9, %v583_v13  ;;  %v911_v15 = vpop.f32.mrb[7].mxu1  ;;  %v587_v16 = vmax.f32 %v581_v11, 0.0 }
 0x3fa   :  { %v588_v17 = vmax.f32 %v584_v14, 0.0 }
 0x3fc   :  { %v589_v18 = vpack.c.bf16 %v588_v17, %v587_v16 }
 0x3fe   :  { %929 = vmatmul.mubr.bf16.vlgmr.msra.gmra.mrb[8].mxu0 %v589_v18 }
 0x4d1   :  { %v695_v19 = vpop.f32.mrb[8].mxu0 }
 0x4d2   :  { %v930_v20 = vpop.f32.mrb[9].mxu0  ;;  %v696_v22 = vadd.f32 %v769_v0, %v695_v19 }
 0x4d3   :  { %v698_v21 = vpop.f32.mrb[10].mxu0 }
 0x4d4   :  { %v699_v23 = vadd.f32 %v769_v0, %v698_v21  ;;  %v931_v24 = vpop.f32.mrb[11].mxu0 }
 0x4d6   :  { %v785_v25 = vpack.c.bf16 %v699_v23, %v696_v22 }
 0x4d8   :  { %786 = vst [vmem:[#allocation13] sm:$0xff] %v785_v25  }
 0x4d9   :  { %1127 = shalt.err (!%p1124_p10)
}
 0x4da   :  { %s1128_s3 = scalar_lea.hbm %s1421_s11, 128 }
 0x4db   :  { %p1129_p11 = scmp.ne.s32.totalorder %s1421_s11, %s1128_s3  ;;  %p1132_p12 = scmp.lt.u32.totalorder %s1128_s3, %s1421_s11 }
 0x4dd   :  { %p1134_p13 = pnand %p1132_p12, %p1129_p11 }
 0x4df   :  { %1137 = shalt.err (!%p1134_p13)
}
 0x4e0   :  { %723 = dma.vmem_to_hbm [thread:$0]  %s718_s21, 128, %s1421_s11, [#allocation4], %s1150_s29, %s1150_s29, %s1151_s30  }
 0x4e1   :  { %1146 = dma.done.wait [#allocation4], 128  }
 0x4e2   :  { %1147 = vsyncadd [#allocation4], 4294967168 }
 0x4e3   :  { %727 = vsyncpa [#allocation3], 1 }
 0x4e4   :  { %728 = vsyncpa [#allocation6], 1 }
 0x4e5   :  { %729 = vsyncpa [#allocation9], 1 }
 0x4e6   :  { %730 = vsyncpa [#allocation12], 1 }
 0x4e7   :  { %731 = vsyncpa [#allocation4], 1 }

</bundles_post_ra>
